<compile_context>
chip_gen: v7x
topology: tpu7x:2x2x1
jax: 0.10.0
libtpu: 0.0.40
codegen_flags: <defaults>
</compile_context>

<pallas_src>
import jax
import jax.numpy as jnp
from jax.experimental import pallas as pl
from jax.experimental.pallas import tpu as pltpu

_LANES = 128
_TILE_ROWS = 2048      # 2048 x 128 f32 = 1 MiB per tile (near HBM roofline)
_N_OUTER = 2           # parallel phase-1 chunks (fills both TensorCores on v7x)


def _round_up(a: int, b: int) -> int:
    return b * ((a + b - 1) // b)


def _vmem_limit_bytes() -> int:
    """Generation-aware scoped-VMEM budget (v5e/v6e: 128 MiB phys, v7x: 64 MiB)."""
    try:
        cap = int(pltpu.get_tpu_info().vmem_capacity_bytes)
    except Exception:                      # unknown generation / query unavailable
        cap = 64 * 1024 * 1024             # conservative (v7x-sized) fallback
    return (cap * 3) // 4


_VMEM_LIMIT = _vmem_limit_bytes()


def _as_f32(x):
    # Static (trace-time) branch: no-op for f32 inputs.
    return x if x.dtype == jnp.float32 else x.astype(jnp.float32)


def _tile_max(x):
    # Sublane reduce (axis 0, pure VPU) first, then ONE cross-lane (XLU) reduce.
    return jnp.max(jnp.max(x, axis=0, keepdims=True), axis=1, keepdims=True)


def _tile_sum(x):
    return jnp.sum(jnp.sum(x, axis=0, keepdims=True), axis=1, keepdims=True)


# ---------------------------------------------------------------------------
# Fused single-block kernel: whole slab resident in one VMEM block
# (one launch, one HBM read + one HBM write).
# ---------------------------------------------------------------------------
def _softmax_fused_kernel(x_ref, o_ref):
    x = _as_f32(x_ref[...])                       # (rows, 128)
    m = _tile_max(x)                              # (1, 1) global max
    m = jnp.where(m == -jnp.inf, 0.0, m)          # all-(-inf) guard (no NaN)
    e = jnp.exp(x - m)
    s = _tile_sum(e)                              # (1, 1) global exp-sum
    o_ref[...] = (e * (1.0 / s)).astype(o_ref.dtype)   # single divide total


# ---------------------------------------------------------------------------
# Phase 1: per-chunk online (max, exp-sum) reduction.
# grid = (N_OUTER "parallel", n_inner "arbitrary"); the (1,1) output blocks
# are resident accumulators across the inner reduction axis.
# ---------------------------------------------------------------------------
def _reduce_kernel(x_ref, m_ref, l_ref):
    j = pl.program_id(1)

    @pl.when(j == 0)
    def _init():
        m_ref[...] = jnp.full_like(m_ref, -jnp.inf)
        l_ref[...] = jnp.zeros_like(l_ref)

    x = _as_f32(x_ref[...])                       # (TILE_ROWS, 128)
    m_old = m_ref[...]
    m_new = jnp.maximum(m_old, _tile_max(x))
    # Guard: if the running max is still -inf (all-(-inf) data / padding so
    # far), shift by 0 instead to avoid exp(-inf - -inf) = NaN.
    m_shift = jnp.where(m_new == -jnp.inf, 0.0, m_new)
    e = jnp.exp(x - m_shift)
    l_ref[...] = l_ref[...] * jnp.exp(m_old - m_shift) + _tile_sum(e)
    m_ref[...] = m_new


# ---------------------------------------------------------------------------
# Phase 2: out = exp(x - c) with c = m + log(l) (scalar passed via SMEM).
# No per-element divide -> phase stays purely DMA-bound.
# ---------------------------------------------------------------------------
def _normalize_kernel(c_ref, x_ref, o_ref):
    x = _as_f32(x_ref[...])
    o_ref[...] = jnp.exp(x - c_ref[0, 0]).astype(o_ref.dtype)


@jax.jit
def softmax_stable(x: jax.Array) -> jax.Array:
    assert jnp.issubdtype(x.dtype, jnp.floating), (
        "softmax_stable expects a floating-point input (needed for -inf padding)")
    orig_shape, orig_dtype = x.shape, x.dtype
    total = x.size
    itemsize = x.dtype.itemsize

    rows = pl.cdiv(total, _LANES)
    elems = rows * _LANES

    # Fused single launch whenever the double-buffered in/out slab plus ~4
    # block-sized f32 temporaries fit the scoped-VMEM budget (generation-aware:
    # roughly 24 MiB of in+out f32 data on v5e/v6e, 12 MiB on v7x).
    fused_vmem_est = 2 * elems * (2 * itemsize) + 4 * elems * 4
    fused = fused_vmem_est <= _VMEM_LIMIT

    padded_rows = rows if fused else _round_up(rows, _N_OUTER * _TILE_ROWS)
    padded_total = padded_rows * _LANES

    flat = x.reshape(-1)
    if padded_total != total:
        # -inf padding: identity for the max, exp(-inf)=0 for the sum; the
        # padded outputs are sliced off below.
        # TODO(synk): fold the ragged-tail handling into the kernels (iota mask
        # against `total`) to avoid these host-side pad/slice copies entirely.
        flat = jnp.pad(flat, (0, padded_total - total),
                       constant_values=-jnp.inf)
    x2d = flat.reshape(padded_rows, _LANES)       # lane-dense slab

    if fused:
        slab_spec = pl.BlockSpec((padded_rows, _LANES), lambda i: (0, 0))
        out2d = pl.pallas_call(
            _softmax_fused_kernel,
            out_shape=jax.ShapeDtypeStruct((padded_rows, _LANES), orig_dtype),
            grid=(1,),
            in_specs=[slab_spec],
            out_specs=slab_spec,
            compiler_params=pltpu.CompilerParams(
                dimension_semantics=("arbitrary",),
                vmem_limit_bytes=_VMEM_LIMIT),
        )(x2d)
    else:
        num_tiles = padded_rows // _TILE_ROWS
        n_inner = num_tiles // _N_OUTER

        # ---- Phase 1: parallel outer chunks x arbitrary inner reduction ----
        part_spec = pl.BlockSpec((None, 1, 1), lambda i, j: (i, 0, 0))
        m_part, l_part = pl.pallas_call(
            _reduce_kernel,
            out_shape=(jax.ShapeDtypeStruct((_N_OUTER, 1, 1), jnp.float32),
                       jax.ShapeDtypeStruct((_N_OUTER, 1, 1), jnp.float32)),
            grid=(_N_OUTER, n_inner),
            in_specs=[pl.BlockSpec((_TILE_ROWS, _LANES),
                                   lambda i, j: (i * n_inner + j, 0))],
            out_specs=(part_spec, part_spec),
            compiler_params=pltpu.CompilerParams(
                dimension_semantics=("parallel", "arbitrary"),
                vmem_limit_bytes=_VMEM_LIMIT),
        )(x2d)

        # ---- Merge the handful of partials (tiny, plain JAX) into the ------
        # ---- single scalar c = global_max + log(global_exp_sum). -----------
        m_part = m_part.reshape(-1)
        l_part = l_part.reshape(-1)
        m_g = jnp.max(m_part)
        m_shift = jnp.where(jnp.isneginf(m_g), 0.0, m_g)
        l_g = jnp.sum(l_part * jnp.exp(m_part - m_shift))
        c = (m_shift + jnp.log(l_g)).reshape(1, 1).astype(jnp.float32)

        # ---- Phase 2: elementwise exp(x - c); independent tiles ------------
        tile_spec = pl.BlockSpec((_TILE_ROWS, _LANES), lambda i: (i, 0))
        out2d = pl.pallas_call(
            _normalize_kernel,
            out_shape=jax.ShapeDtypeStruct((padded_rows, _LANES), orig_dtype),
            grid=(num_tiles,),
            in_specs=[pl.BlockSpec(memory_space=pltpu.MemorySpace.SMEM),
                      tile_spec],
            out_specs=tile_spec,
            compiler_params=pltpu.CompilerParams(
                dimension_semantics=("parallel",),
                vmem_limit_bytes=_VMEM_LIMIT),
        )(c, x2d)

    if padded_total != total:
        return out2d.reshape(-1)[:total].reshape(orig_shape)
    return out2d.reshape(orig_shape)


if __name__ == "__main__":
    key = jax.random.PRNGKey(0)
    k1, k2, k3 = jax.random.split(key, 3)

    def reference(x):
        c = jnp.max(x)
        e = jnp.exp(x - c)
        return e / jnp.sum(e)

    # Primary shape from the module spec (NCHW) -> fused single-launch path.
    x1 = jax.random.normal(k1, (2, 4, 16, 16), dtype=jnp.float32)
    out1 = jax.block_until_ready(softmax_stable(x1))
    assert out1.shape == x1.shape and out1.dtype == x1.dtype
    assert jnp.allclose(out1, reference(x1), atol=1e-6, rtol=1e-6)
    assert jnp.allclose(jnp.sum(out1), 1.0, atol=1e-5)

    # Ragged total (not a multiple of 128) -> fused path with -inf tail pad.
    x2 = jax.random.normal(k2, (4, 8, 63, 65), dtype=jnp.float32)
    out2 = jax.block_until_ready(softmax_stable(x2))
    assert out2.shape == x2.shape and out2.dtype == x2.dtype
    assert jnp.allclose(out2, reference(x2), atol=1e-6, rtol=1e-6)
    assert jnp.allclose(jnp.sum(out2), 1.0, atol=1e-4)

    # Larger ragged tensor (> fused VMEM budget on all generations) ->
    # two-phase path: parallel partial (m, l) reduce + exp(x - c) normalize.
    x3 = jax.random.normal(k3, (4095, 2051), dtype=jnp.float32)
    out3 = jax.block_until_ready(softmax_stable(x3))
    assert out3.shape == x3.shape and out3.dtype == x3.dtype
    assert jnp.allclose(out3, reference(x3), atol=1e-6, rtol=1e-6)
    assert jnp.allclose(jnp.sum(out3), 1.0, atol=2e-3)

    print("KERNEL_OK")
</pallas_src>

<mosaic_0001>
module attributes {stable_mosaic.version = 11 : i64} {
  func.func @_softmax_fused_kernel(%arg0: i32, %arg1: memref<16x128xf32, #tpu.memory_space<vmem>>, %arg2: memref<16x128xf32, #tpu.memory_space<vmem>>) attributes {dimension_semantics = [#tpu.dimension_semantics<arbitrary>], iteration_bounds = array<i64: 1>, scalar_prefetch = 0 : i64, scratch_operands = 0 : i64, tpu.core_type = #tpu.core_type<tc>, window_params = [{pipeline_mode = #tpu.pipeline_mode<synchronous>, transform_indices = @transform_0, window_bounds = array<i64: 16, 128>}, {pipeline_mode = #tpu.pipeline_mode<synchronous>, transform_indices = @transform_1, window_bounds = array<i64: 16, 128>}]} {
    %c0 = arith.constant 0 : index
    %c0_0 = arith.constant 0 : index
    %0 = vector.load %arg1[%c0, %c0_0] : memref<16x128xf32, #tpu.memory_space<vmem>>, vector<16x128xf32>
    %cst = arith.constant dense<0xFF800000> : vector<128xf32>
    %1 = vector.multi_reduction <maximumf>, %0, %cst [0] : vector<16x128xf32> to vector<128xf32>
    %2 = vector.shape_cast %1 : vector<128xf32> to vector<1x128xf32>
    %cst_1 = arith.constant dense<0xFF800000> : vector<1xf32>
    %3 = vector.multi_reduction <maximumf>, %2, %cst_1 [1] : vector<1x128xf32> to vector<1xf32>
    %4 = vector.shape_cast %3 : vector<1xf32> to vector<1x1xf32>
    %cst_2 = arith.constant 0xFF800000 : f32
    %5 = vector.broadcast %cst_2 : f32 to vector<1x1xf32>
    %6 = arith.cmpf oeq, %4, %5 : vector<1x1xf32>
    %cst_3 = arith.constant 0.000000e+00 : f32
    %7 = vector.broadcast %cst_3 : f32 to vector<1x1xf32>
    %8 = arith.select %6, %7, %4 : vector<1x1xi1>, vector<1x1xf32>
    %9 = vector.broadcast %8 : vector<1x1xf32> to vector<16x128xf32>
    %10 = arith.subf %0, %9 : vector<16x128xf32>
    %11 = math.exp %10 : vector<16x128xf32>
    %cst_4 = arith.constant dense<0.000000e+00> : vector<128xf32>
    %12 = vector.multi_reduction <add>, %11, %cst_4 [0] : vector<16x128xf32> to vector<128xf32>
    %13 = vector.shape_cast %12 : vector<128xf32> to vector<1x128xf32>
    %cst_5 = arith.constant dense<0.000000e+00> : vector<1xf32>
    %14 = vector.multi_reduction <add>, %13, %cst_5 [1] : vector<1x128xf32> to vector<1xf32>
    %15 = vector.shape_cast %14 : vector<1xf32> to vector<1x1xf32>
    %cst_6 = arith.constant 1.000000e+00 : f32
    %16 = vector.broadcast %cst_6 : f32 to vector<1x1xf32>
    %17 = arith.divf %16, %15 : vector<1x1xf32>
    %18 = vector.broadcast %17 : vector<1x1xf32> to vector<16x128xf32>
    %19 = arith.mulf %11, %18 : vector<16x128xf32>
    %c0_7 = arith.constant 0 : index
    %c0_8 = arith.constant 0 : index
    %20 = vector.load %arg2[%c0_7, %c0_8] : memref<16x128xf32, #tpu.memory_space<vmem>>, vector<16x128xf32>
    tpu.vector_store %arg2[%c0_7, %c0_8], %19 {strides = array<i32>} : memref<16x128xf32, #tpu.memory_space<vmem>>, vector<16x128xf32>,
    return
  }
  func.func @transform_0(%arg0: i32) -> (i32, i32) {
    %c0_i32 = arith.constant 0 : i32
    %c0_i32_0 = arith.constant 0 : i32
    %c0_i32_1 = arith.constant 0 : i32
    return %c0_i32, %c0_i32_0 : i32, i32
  }
  func.func @transform_1(%arg0: i32) -> (i32, i32) {
    %c0_i32 = arith.constant 0 : i32
    %c0_i32_0 = arith.constant 0 : i32
    %c0_i32_1 = arith.constant 0 : i32
    return %c0_i32, %c0_i32_0 : i32, i32
  }
}

</mosaic_0001>

<bundles_post_ra>
// kernel: softmax_stable.1
= control target key start
LH: loop header
LB: loop body
LE: loop exit
PB: predicated region body
PF: predicated region fallthrough
CT: control target
= control target key end

     0   :  { %s74_s0 = inlined_call_operand.vmem [shape: f32[16,128], index: 0, kind: input, shape index: {}]   ;;  %s75_s1 = inlined_call_operand.vmem [shape: f32[16,128], index: 1, kind: output, shape index: {}]  }
   0x1   :  { %v8_v0 = vld [vmem:[%s74_s0] sm:$0xff]  ;;  %v9_v1 = vld [vmem:[%s74_s0 + $0x8] sm:$0xff] }
   0x2   :  { %v10_v2 = vmax.f32 %v8_v0, %v9_v1 }
   0x4   :  { %v11_v3 = vrot.slane %v10_v2, 4 }
   0x6   :  { %v12_v4 = vmax.f32 %v10_v2, %v11_v3 }
   0x8   :  { %v13_v5 = vrot.slane %v12_v4, 2 }
   0xa   :  { %v14_v6 = vmax.f32 %v12_v4, %v13_v5 }
   0xc   :  { %v15_v7 = vrot.slane %v14_v6, 1 }
   0xe   :  { %v16_v8 = vmax.f32 %v14_v6, %v15_v7 }
  0x10   :  { %17 = vmax.xlane.f32.xlu0 %v16_v8 }
  0x9d   :  { %v18_v9 = vpop.xlane.xlu0 %17 }
  0x9e   :  { %vm19_vm0 = vcmp.eq.f32.partialorder %v18_v9, -inf }
  0x9f   :  { %v20_v10 = vsel %vm19_vm0, 0.0, %v18_v9 }
  0xa0   :  { %v21_v11 = vsub.f32 %v8_v0, %v20_v10  ;;  %v22_v12 = vsub.f32 %v9_v1, %v20_v10 }
  0xa2   :  { %v23_v13 = vmul.f32 1.442695, %v21_v11  ;;  %v25_v14 = vmul.f32 1.442695, %v22_v12 }
  0xa4   :  { %46 = vpow2.f32 %v23_v13 }
  0xa5   :  { %48 = vpow2.f32 %v25_v14 }
  0xae   :  { %v47_v15 = vpop.eup %46 }
  0xaf   :  { %v49_v16 = vpop.eup %48 }
  0xb0   :  { %v27_v17 = vadd.f32 %v49_v16, %v47_v15 }
  0xb2   :  { %v28_v18 = vrot.slane %v27_v17, 4 }
  0xb4   :  { %v29_v19 = vadd.f32 %v28_v18, %v27_v17 }
  0xb6   :  { %v30_v20 = vrot.slane %v29_v19, 2 }
  0xb8   :  { %v31_v21 = vadd.f32 %v30_v20, %v29_v19 }
  0xba   :  { %v32_v22 = vrot.slane %v31_v21, 1 }
  0xbc   :  { %v33_v23 = vadd.f32 %v32_v22, %v31_v21 }
  0xbe   :  { %34 = vadd.xlane.f32.xlu0 %v33_v23 }
 0x14b   :  { %v35_v24 = vpop.xlane.xlu0 %34 }
 0x14c   :  { %50 = vrcp.f32 %v35_v24 }
 0x156   :  { %v51_v25 = vpop.eup %50 }
 0x157   :  { %v38_v26 = vmul.f32 %v51_v25, %v47_v15  ;;  %v39_v27 = vmul.f32 %v51_v25, %v49_v16 }
 0x159   :  { %40 = vst [vmem:[%s75_s1] sm:$0xff] %v38_v26  ;;  %41 = vst [vmem:[%s75_s1 + $0x8] sm:$0xff] %v39_v27 }

</bundles_post_ra>
